<compile_context>
chip_gen: v5e
topology: v5e:2x2
jax: 0.10.0
libtpu: 0.0.40
codegen_flags: <defaults>
</compile_context>

<pallas_src>
import functools

import jax
import jax.numpy as jnp
from jax import lax
from jax.experimental import pallas as pl
from jax.experimental.pallas import tpu as pltpu


def _round_up(x, m):
    return (x + m - 1) // m * m


def _resblock_kernel(cin_p, chunk, patches_ref, w1_ref, b1_ref, w2s_ref, b2s_ref, o_ref):
    tm = o_ref.shape[0]
    # Sub-tile the M-tile so matmul-1 of chunk i+1 can co-issue with the VPU epilogue of chunk i.
    for c0 in range(0, tm, chunk):
        tc = min(chunk, tm - c0)
        p = patches_ref[pl.ds(c0, tc), :]                               # (tc, K_p) bf16
        # main branch: 3x3 conv (BN1 scale pre-folded into w1) -> +bias -> ReLU
        h = jnp.dot(p, w1_ref[...], preferred_element_type=jnp.float32)
        h = jnp.maximum(h + b1_ref[...], 0.0).astype(w2s_ref.dtype)     # (tc, Cout_p) bf16
        # skip input = centre tap of the 3x3 patches; lane-aligned static slice (columns 0:Cin_p)
        center = p[:, :cin_p]                                           # (tc, Cin_p) bf16
        # fused: [1x1 conv (BN2-folded) | skip 1x1 conv (BNs-folded)] in a single MXU pass
        lhs = jnp.concatenate([h, center], axis=-1)                     # (tc, Cout_p + Cin_p)
        y = jnp.dot(lhs, w2s_ref[...], preferred_element_type=jnp.float32) + b2s_ref[...]
        # residual already included; final ReLU, store f32
        o_ref[pl.ds(c0, tc), :] = jnp.maximum(y, 0.0)


def _fold_bn(gamma, beta, mean, var, eps=1e-5):
    scale = (gamma / jnp.sqrt(var + eps)).astype(jnp.float32)
    bias = (beta - mean * scale).astype(jnp.float32)
    return scale, bias


def resblock_forward(x_nchw, params, stride, *, tm=512, compute_dtype=jnp.bfloat16):
    """x_nchw: (N, Cin, H, W) float32. Returns (N, Cout, Ho, Wo) float32.

    tm: M-tile size. 512 is safe for v7x's 64 MiB VMEM; on v5e/v6e (128 MiB) tm=1024 is a
    profitable sweep. (A deeper pl.Buffered pipeline on the patches spec helps on v5e.)
    """
    N, Cin, H, W = x_nchw.shape
    Cout = params["w1"].shape[0]
    s = stride
    Ho = (H + 2 - 3) // s + 1
    Wo = (W + 2 - 3) // s + 1
    M = N * Ho * Wo

    # ---- lane-aligned channel / K padding and tile-aligned rows ----
    Cout_p = _round_up(Cout, 128)
    Cin_p = _round_up(Cin, 128)            # centre tap padded to full vregs (free slice in-kernel)
    K_p = _round_up(Cin_p + 8 * Cin, 128)  # contraction dim of matmul-1, multiple of 128
    M_p = _round_up(M, 16)
    if M_p <= tm:
        TM = M_p                           # single tile
    else:
        TM = tm
        M_p = _round_up(M, TM)
    grid_m = M_p // TM
    # in-kernel sub-chunk (rows) for MXU/VPU overlap
    TC = 256 if (TM > 256 and TM % 256 == 0) else TM

    # ---- im2col in bf16, single materialization; centre tap first (columns 0:Cin_p) ----
    x = jnp.transpose(x_nchw, (0, 2, 3, 1)).astype(compute_dtype)      # NHWC bf16
    xp = jnp.pad(x, ((0, 0), (1, 1), (1, 1), (0, 0)))                  # pad=1 for the 3x3 conv

    def tap(kh, kw):
        return xp[:, kh:kh + (Ho - 1) * s + 1:s,
                     kw:kw + (Wo - 1) * s + 1:s, :].reshape(M, Cin)

    cols = [tap(1, 1)]
    if Cin_p > Cin:
        cols.append(jnp.zeros((M, Cin_p - Cin), compute_dtype))
    for kh in range(3):
        for kw in range(3):
            if (kh, kw) != (1, 1):
                cols.append(tap(kh, kw))
    pad_cols = K_p - (Cin_p + 8 * Cin)
    if pad_cols > 0:
        cols.append(jnp.zeros((M, pad_cols), compute_dtype))
    patches = jnp.concatenate(cols, axis=-1)                           # (M, K_p) bf16
    if M_p > M:
        patches = jnp.pad(patches, ((0, M_p - M), (0, 0)))

    # ---- fold BN scales into weights (f32 fold, then bf16); biases stay separate in f32 ----
    s1, b1 = _fold_bn(*params["bn1"])
    s2, b2 = _fold_bn(*params["bn2"])

    # w1 rows ordered to match the patch columns: centre tap (padded to Cin_p), then the 8 others.
    w1_t = jnp.transpose(params["w1"], (2, 3, 1, 0))                   # (3, 3, Cin, Cout)
    rows = [w1_t[1, 1]]
    if Cin_p > Cin:
        rows.append(jnp.zeros((Cin_p - Cin, Cout), jnp.float32))
    for kh in range(3):
        for kw in range(3):
            if (kh, kw) != (1, 1):
                rows.append(w1_t[kh, kw])
    w1 = jnp.concatenate(rows, axis=0) * s1[None, :]                   # (Cin_p + 8*Cin, Cout)
    w1p = jnp.pad(w1, ((0, K_p - w1.shape[0]),
                       (0, Cout_p - Cout))).astype(compute_dtype)      # (K_p, Cout_p)

    w2 = jnp.transpose(params["w2"], (2, 3, 1, 0)).reshape(Cout, Cout) * s2[None, :]
    if "wsk" in params:
        ssk, bsk = _fold_bn(*params["bns"])
        wsk = jnp.transpose(params["wsk"], (2, 3, 1, 0)).reshape(Cin, Cout) * ssk[None, :]
    else:
        # identity skip (module case: stride == 1 and Cin == Cout): skip(x) = centre tap itself
        wsk = jnp.eye(Cin, Cout, dtype=jnp.float32)
        bsk = jnp.zeros((Cout,), jnp.float32)

    # stacked RHS for the fused second matmul: [w2 ; wsk], bias = b2 + bsk
    w2_pad = jnp.pad(w2, ((0, Cout_p - Cout), (0, Cout_p - Cout)))
    wsk_pad = jnp.pad(wsk, ((0, Cin_p - Cin), (0, Cout_p - Cout)))
    w2s = jnp.concatenate([w2_pad, wsk_pad], axis=0).astype(compute_dtype)   # (Cout_p+Cin_p, Cout_p)
    b1p = jnp.pad(b1, (0, Cout_p - Cout)).reshape(1, Cout_p).astype(jnp.float32)
    b2s = jnp.pad(b2 + bsk, (0, Cout_p - Cout)).reshape(1, Cout_p).astype(jnp.float32)

    kernel = functools.partial(_resblock_kernel, Cin_p, TC)

    itemsize = jnp.dtype(compute_dtype).itemsize
    flops = 2 * M_p * Cout_p * (K_p + Cout_p + Cin_p)
    bytes_accessed = (M_p * K_p * itemsize                            # patches in
                      + (w1p.size + w2s.size) * itemsize              # weights
                      + 2 * Cout_p * 4                                # biases
                      + M_p * Cout_p * 4)                             # f32 out

    # VMEM budget from actual buffer sizes (double-buffered I/O + resident weights + live temps),
    # with headroom, capped below v7x's 64 MiB physical VMEM.
    vmem_est = (2 * TM * K_p * itemsize                               # patches tile x2
                + 2 * TM * Cout_p * 4                                 # out tile x2
                + 2 * (K_p * Cout_p + (Cout_p + Cin_p) * Cout_p) * itemsize   # weights x2
                + 8 * Cout_p * 4                                      # biases
                + 2 * TC * (K_p + Cout_p + Cin_p) * itemsize          # live bf16 temps
                + 4 * TC * Cout_p * 4)                                # live f32 temps
    vmem_limit = int(min(max(vmem_est * 3 // 2, 8 * 1024 * 1024), 56 * 1024 * 1024))

    out = pl.pallas_call(
        kernel,
        out_shape=jax.ShapeDtypeStruct((M_p, Cout_p), jnp.float32),
        grid_spec=pltpu.PrefetchScalarGridSpec(
            num_scalar_prefetch=0,
            grid=(grid_m,),
            in_specs=[
                pl.BlockSpec((TM, K_p), lambda i: (i, 0)),                  # patches: tiled over M
                pl.BlockSpec((K_p, Cout_p), lambda i: (0, 0)),              # w1 (BN1-folded), resident
                pl.BlockSpec((1, Cout_p), lambda i: (0, 0)),                # b1
                pl.BlockSpec((Cout_p + Cin_p, Cout_p), lambda i: (0, 0)),   # [w2 ; wsk] stacked
                pl.BlockSpec((1, Cout_p), lambda i: (0, 0)),                # b2 + bsk
            ],
            out_specs=pl.BlockSpec((TM, Cout_p), lambda i: (i, 0)),
        ),
        compiler_params=pltpu.CompilerParams(
            dimension_semantics=("parallel",),                              # megacore-shard M on v7x
            vmem_limit_bytes=vmem_limit,
        ),
        cost_estimate=pl.CostEstimate(flops=flops, transcendentals=0,
                                      bytes_accessed=bytes_accessed),
    )(patches, w1p, b1p, w2s, b2s)

    out = out[:M, :Cout].reshape(N, Ho, Wo, Cout)
    return jnp.transpose(out, (0, 3, 1, 2))                                # back to NCHW


def _reference_forward(x_nchw, params, stride):
    """Pure-JAX f32 reference (lax.conv), NCHW semantics like PyTorch."""
    def conv(x, w, s, pad):
        return lax.conv_general_dilated(
            x, w, window_strides=(s, s), padding=[(pad, pad), (pad, pad)],
            dimension_numbers=("NCHW", "OIHW", "NCHW"))

    def bn(x, p):
        gamma, beta, mean, var = p
        scale = gamma / jnp.sqrt(var + 1e-5)
        bias = beta - mean * scale
        return x * scale[None, :, None, None] + bias[None, :, None, None]

    h = conv(x_nchw, params["w1"], stride, 1)
    h = jax.nn.relu(bn(h, params["bn1"]))
    h = bn(conv(h, params["w2"], 1, 0), params["bn2"])
    if "wsk" in params:
        sk = bn(conv(x_nchw, params["wsk"], stride, 0), params["bns"])
    else:
        sk = x_nchw
    return jax.nn.relu(h + sk)


def init_params(key, in_channels, out_channels):
    ks = jax.random.split(key, 8)

    def bn_params(k, c):
        k1, k2, k3, k4 = jax.random.split(k, 4)
        gamma = 0.5 + jax.random.uniform(k1, (c,), jnp.float32)
        beta = 0.1 * jax.random.normal(k2, (c,), jnp.float32)
        mean = 0.1 * jax.random.normal(k3, (c,), jnp.float32)
        var = 0.5 + jax.random.uniform(k4, (c,), jnp.float32)
        return (gamma, beta, mean, var)

    return {
        "w1": 0.1 * jax.random.normal(ks[0], (out_channels, in_channels, 3, 3), jnp.float32),
        "bn1": bn_params(ks[1], out_channels),
        "w2": 0.1 * jax.random.normal(ks[2], (out_channels, out_channels, 1, 1), jnp.float32),
        "bn2": bn_params(ks[3], out_channels),
        "wsk": 0.1 * jax.random.normal(ks[4], (out_channels, in_channels, 1, 1), jnp.float32),
        "bns": bn_params(ks[5], out_channels),
    }


if __name__ == "__main__":
    # in_channels < out_channels  => stride = 2 and a conv+BN skip branch (same rule as the module)
    N, Cin, H, W = 2, 4, 16, 16
    Cout = 8
    stride = 1 if Cin >= Cout else 2

    key = jax.random.PRNGKey(0)
    kx, kp = jax.random.split(key)
    x = jax.random.normal(kx, (N, Cin, H, W), jnp.float32)
    params = init_params(kp, Cin, Cout)

    y = jax.block_until_ready(resblock_forward(x, params, stride))
    y_ref = jax.block_until_ready(_reference_forward(x, params, stride))

    assert y.shape == (N, Cout, H // stride, W // stride), y.shape
    max_err = float(jnp.max(jnp.abs(y - y_ref)))
    # bf16 matmul operands vs. f32 reference -> loosened tolerance
    assert jnp.allclose(y, y_ref, atol=5e-2, rtol=5e-2), max_err

    print("KERNEL_OK")
</pallas_src>

<mosaic_0001>
module attributes {stable_mosaic.version = 11 : i64} {
  func.func @_resblock_kernel(%arg0: i32, %arg1: memref<128x256xbf16, #tpu.memory_space<vmem>>, %arg2: memref<256x128xbf16, #tpu.memory_space<vmem>>, %arg3: memref<1x128xf32, #tpu.memory_space<vmem>>, %arg4: memref<256x128xbf16, #tpu.memory_space<vmem>>, %arg5: memref<1x128xf32, #tpu.memory_space<vmem>>, %arg6: memref<128x128xf32, #tpu.memory_space<vmem>>) attributes {dimension_semantics = [#tpu.dimension_semantics<parallel>], iteration_bounds = array<i64: 1>, scalar_prefetch = 0 : i64, scratch_operands = 0 : i64, tpu.core_type = #tpu.core_type<tc>, window_params = [{transform_indices = @transform_0, window_bounds = array<i64: 128, 256>}, {pipeline_mode = #tpu.pipeline_mode<synchronous>, transform_indices = @transform_1, window_bounds = array<i64: 256, 128>}, {pipeline_mode = #tpu.pipeline_mode<synchronous>, transform_indices = @transform_2, window_bounds = array<i64: 1, 128>}, {pipeline_mode = #tpu.pipeline_mode<synchronous>, transform_indices = @transform_3, window_bounds = array<i64: 256, 128>}, {pipeline_mode = #tpu.pipeline_mode<synchronous>, transform_indices = @transform_4, window_bounds = array<i64: 1, 128>}, {transform_indices = @transform_5, window_bounds = array<i64: 128, 128>}]} {
    %c0 = arith.constant 0 : index
    %c0_0 = arith.constant 0 : index
    %0 = vector.load %arg1[%c0, %c0_0] : memref<128x256xbf16, #tpu.memory_space<vmem>>, vector<128x256xbf16>
    %c0_1 = arith.constant 0 : index
    %c0_2 = arith.constant 0 : index
    %1 = vector.load %arg2[%c0_1, %c0_2] : memref<256x128xbf16, #tpu.memory_space<vmem>>, vector<256x128xbf16>
    %cst = arith.constant dense<0.000000e+00> : vector<128x128xf32>
    %2 = tpu.matmul %0, %1, %cst {dimension_numbers = #tpu.dot_dimension_numbers<[1], [0], [0], [1], [0, 0, 1, 1], [], []>} : vector<128x256xbf16>, vector<256x128xbf16>, vector<128x128xf32> -> vector<128x128xf32>
    %c0_3 = arith.constant 0 : index
    %c0_4 = arith.constant 0 : index
    %3 = vector.load %arg3[%c0_3, %c0_4] : memref<1x128xf32, #tpu.memory_space<vmem>>, vector<1x128xf32>
    %4 = vector.broadcast %3 : vector<1x128xf32> to vector<128x128xf32>
    %5 = arith.addf %2, %4 : vector<128x128xf32>
    %cst_5 = arith.constant 0.000000e+00 : f32
    %6 = vector.broadcast %cst_5 : f32 to vector<128x128xf32>
    %7 = arith.maximumf %5, %6 : vector<128x128xf32>
    %8 = arith.truncf %7 : vector<128x128xf32> to vector<128x128xbf16>
    %9 = vector.extract_strided_slice %0 {offsets = [0, 0], sizes = [128, 128], strides = [1, 1]} : vector<128x256xbf16> to vector<128x128xbf16>
    %10 = tpu.concatenate %8, %9 in 1 : vector<128x128xbf16>, vector<128x128xbf16> -> vector<128x256xbf16>
    %c0_6 = arith.constant 0 : index
    %c0_7 = arith.constant 0 : index
    %11 = vector.load %arg4[%c0_6, %c0_7] : memref<256x128xbf16, #tpu.memory_space<vmem>>, vector<256x128xbf16>
    %cst_8 = arith.constant dense<0.000000e+00> : vector<128x128xf32>
    %12 = tpu.matmul %10, %11, %cst_8 {dimension_numbers = #tpu.dot_dimension_numbers<[1], [0], [0], [1], [0, 0, 1, 1], [], []>} : vector<128x256xbf16>, vector<256x128xbf16>, vector<128x128xf32> -> vector<128x128xf32>
    %c0_9 = arith.constant 0 : index
    %c0_10 = arith.constant 0 : index
    %13 = vector.load %arg5[%c0_9, %c0_10] : memref<1x128xf32, #tpu.memory_space<vmem>>, vector<1x128xf32>
    %14 = vector.broadcast %13 : vector<1x128xf32> to vector<128x128xf32>
    %15 = arith.addf %12, %14 : vector<128x128xf32>
    %cst_11 = arith.constant 0.000000e+00 : f32
    %16 = vector.broadcast %cst_11 : f32 to vector<128x128xf32>
    %17 = arith.maximumf %15, %16 : vector<128x128xf32>
    %c0_12 = arith.constant 0 : index
    %c0_13 = arith.constant 0 : index
    %18 = vector.load %arg6[%c0_12, %c0_13] : memref<128x128xf32, #tpu.memory_space<vmem>>, vector<128x128xf32>
    tpu.vector_store %arg6[%c0_12, %c0_13], %17 {strides = array<i32>} : memref<128x128xf32, #tpu.memory_space<vmem>>, vector<128x128xf32>,
    return
  }
  func.func @transform_0(%arg0: i32) -> (i32, i32) {
    %c0_i32 = arith.constant 0 : i32
    %c0_i32_0 = arith.constant 0 : i32
    return %arg0, %c0_i32 : i32, i32
  }
  func.func @transform_1(%arg0: i32) -> (i32, i32) {
    %c0_i32 = arith.constant 0 : i32
    %c0_i32_0 = arith.constant 0 : i32
    %c0_i32_1 = arith.constant 0 : i32
    return %c0_i32, %c0_i32_0 : i32, i32
  }
  func.func @transform_2(%arg0: i32) -> (i32, i32) {
    %c0_i32 = arith.constant 0 : i32
    %c0_i32_0 = arith.constant 0 : i32
    %c0_i32_1 = arith.constant 0 : i32
    return %c0_i32, %c0_i32_0 : i32, i32
  }
  func.func @transform_3(%arg0: i32) -> (i32, i32) {
    %c0_i32 = arith.constant 0 : i32
    %c0_i32_0 = arith.constant 0 : i32
    %c0_i32_1 = arith.constant 0 : i32
    return %c0_i32, %c0_i32_0 : i32, i32
  }
  func.func @transform_4(%arg0: i32) -> (i32, i32) {
    %c0_i32 = arith.constant 0 : i32
    %c0_i32_0 = arith.constant 0 : i32
    %c0_i32_1 = arith.constant 0 : i32
    return %c0_i32, %c0_i32_0 : i32, i32
  }
  func.func @transform_5(%arg0: i32) -> (i32, i32) {
    %c0_i32 = arith.constant 0 : i32
    %c0_i32_0 = arith.constant 0 : i32
    return %arg0, %c0_i32 : i32, i32
  }
}

</mosaic_0001>

<bundles_post_ra>
// kernel: tpu_custom_call.1
= control target key start
LH: loop header
LB: loop body
LE: loop exit
PB: predicated region body
PF: predicated region fallthrough
CT: control target
= control target key end

     0   :  { %10 = vsyncpa [#allocation3], 0  ;;  %s1238_s0 = inlined_call_operand.hbm [shape: bf16[128,256], index: 0, kind: input, shape index: {}]   ;;  %s1239_s1 = inlined_call_operand.hbm [shape: bf16[256,128], index: 1, kind: input, shape index: {}]   ;;  %s1240_s2 = inlined_call_operand.vmem [shape: f32[1,128], index: 2, kind: input, shape index: {}]   ;;  %s1241_s3 = inlined_call_operand.hbm [shape: bf16[256,128], index: 3, kind: input, shape index: {}]   ;;  %s1242_s4 = inlined_call_operand.vmem [shape: f32[1,128], index: 4, kind: input, shape index: {}]   ;;  %s1243_s5 = inlined_call_operand.hbm [shape: f32[128,128], index: 5, kind: output, shape index: {}]  }
   0x1   :  { %11 = vsyncpa [#allocation6], 0  ;;  %s30_s20 = sshll.u32 %s1239_s1, 4  ;;  %s31_s20 = int_to_ptr.hbm [resolvable:$true] %s30_s20 }
   0x2   :  { %12 = vsyncpa [#allocation4], 0  ;;  %s1108_s21 = smov [#allocation5]   ;;  %s17_s25 = sshll.u32 %s1238_s0, 4  ;;  %s18_s25 = int_to_ptr.hbm [resolvable:$true] %s17_s25 }
   0x3   :  { %s32_s22 = sshll.u32 %s1108_s21, 4  ;;  %s1109_s26 = smov 64   ;;  %s33_s22 = int_to_ptr.vmem [resolvable:$true] %s32_s22 }
   0x4   :  { %s1110_s27 = smov 4   ;;  %s1111_s28 = smov [#allocation2]  }
   0x5   :  { %38 = dma.hbm_to_vmem [thread:$0]  %s31_s20, 2048, %s33_s22, [#allocation6], %s1109_s26, %s1109_s26, %s1110_s27  }
   0x6   :  { %s19_s29 = sshll.u32 %s1111_s28, 4  ;;  %s1112_s30 = smov 128   ;;  %s20_s29 = int_to_ptr.vmem [resolvable:$true] %s19_s29 }
   0x7   :  { %s1113_s6 = smov 8   ;;  %s45_s8 = sshll.u32 %s1241_s3, 4  ;;  %s46_s8 = int_to_ptr.hbm [resolvable:$true] %s45_s8 }
   0x8   :  { %25 = dma.hbm_to_vmem [thread:$0]  %s18_s25, 2048, %s20_s29, [#allocation3], %s1112_s30, %s1112_s30, %s1113_s6  }
   0x9   :  { %s1114_s9 = smov [#allocation7]  }
   0xa   :  { %s47_s0 = sshll.u32 %s1114_s9, 4  ;;  %s48_s0 = int_to_ptr.vmem [resolvable:$true] %s47_s0 }
   0xb   :  { %53 = dma.hbm_to_vmem [thread:$0]  %s46_s8, 2048, %s48_s0, [#allocation6], %s1109_s26, %s1109_s26, %s1110_s27  }
   0xc   :  { %1102 = dma.done.wait [#allocation3], 2048  }
   0xd   :  { %1103 = vsyncadd [#allocation3], 4294965248 }
   0xe   :  { %1104 = dma.done.wait [#allocation6], 4096  }
   0xf   :  { %1105 = vsyncadd [#allocation6], 4294963200  ;;  %v971_v0 = vld [vmem:[#allocation5 + $0x38] sm:$0xff]  ;;  %v970_v2 = vld [vmem:[#allocation5 + $0x30] sm:$0xff]  ;;  %s742_s15 = sshll.u32 %s1243_s5, 4  ;;  %s743_s15 = int_to_ptr.hbm [resolvable:$true] %s742_s15 }
  0x10   :  { %v979_v1 = vld [vmem:[#allocation5 + $0x78] sm:$0xff]  ;;  %296 = vmatpush.bf16.msra.mxu0 %v971_v0  ;;  %v978_v3 = vld [vmem:[#allocation5 + $0x70] sm:$0xff]  ;;  %v969_v4 = vld [vmem:[#allocation5 + $0x28] sm:$0xff] }
  0x11   :  { %345 = vmatpush.bf16.msra.mxu1 %v979_v1  ;;  %v977_v5 = vld [vmem:[#allocation5 + $0x68] sm:$0xff]  ;;  %v968_v6 = vld [vmem:[#allocation5 + $0x20] sm:$0xff]  ;;  %v967_v8 = vld [vmem:[#allocation5 + $0x18] sm:$0xff] }
  0x12   :  { %v976_v7 = vld [vmem:[#allocation5 + $0x60] sm:$0xff]  ;;  %v975_v9 = vld [vmem:[#allocation5 + $0x58] sm:$0xff]  ;;  %v966_v10 = vld [vmem:[#allocation5 + $0x10] sm:$0xff] }
  0x13   :  { %v974_v11 = vld [vmem:[#allocation5 + $0x50] sm:$0xff]  ;;  %v965_v12 = vld [vmem:[#allocation5 + $0x8] sm:$0xff]  ;;  %v964_v14 = vld [vmem:[#allocation5] sm:$0xff] }
  0x14   :  { %297 = vmatpush.bf16.msra.mxu0 %v970_v2  ;;  %v973_v13 = vld [vmem:[#allocation5 + $0x48] sm:$0xff]  ;;  %v972_v15 = vld [vmem:[#allocation5 + $0x40] sm:$0xff]  ;;  %v766_v22 = vld [vmem:[#allocation2 + $0x10] sm:$0xf] }
  0x15   :  { %346 = vmatpush.bf16.msra.mxu1 %v978_v3  ;;  %v758_v16 = vld [vmem:[#allocation2] sm:$0xf]  ;;  %v949_v17 = vld [vmem:[#allocation2 + $0x4] sm:$0xf0]  ;;  %v948_v18 = vld [vmem:[#allocation2 + $0x4] sm:$0xf] }
  0x16   :  { %v760_v19 = vld [vmem:[#allocation2 + $0x8] sm:$0xf0]  ;;  %v1158_v20 = vor.u32 %v949_v17, %v758_v16  ;;  %v951_v23 = vld [vmem:[#allocation2 + $0x14] sm:$0xf0]  ;;  %v950_v24 = vld [vmem:[#allocation2 + $0x14] sm:$0xf] }
  0x17   :  { %v763_v21 = vor.u32 %v948_v18, %v760_v19  ;;  %v768_v25 = vld [vmem:[#allocation2 + $0x18] sm:$0xf0]  ;;  %v1161_v26 = vor.u32 %v951_v23, %v766_v22  ;;  %v774_v28 = vld [vmem:[#allocation2 + $0x20] sm:$0xf]  ;;  %v953_v29 = vld [vmem:[#allocation2 + $0x24] sm:$0xf0] }
  0x18   :  { %298 = vmatpush.bf16.msra.mxu0 %v969_v4  ;;  %v771_v27 = vor.u32 %v950_v24, %v768_v25  ;;  %v952_v30 = vld [vmem:[#allocation2 + $0x24] sm:$0xf]  ;;  %v776_v31 = vld [vmem:[#allocation2 + $0x28] sm:$0xf0]  ;;  %v1164_v32 = vor.u32 %v953_v29, %v774_v28  ;;  %v782_v34 = vld [vmem:[#allocation2 + $0x30] sm:$0xf] }
  0x19   :  { %347 = vmatpush.bf16.msra.mxu1 %v977_v5  ;;  %v779_v33 = vor.u32 %v952_v30, %v776_v31  ;;  %v955_v35 = vld [vmem:[#allocation2 + $0x34] sm:$0xf0]  ;;  %v954_v36 = vld [vmem:[#allocation2 + $0x34] sm:$0xf]  ;;  %v784_v37 = vld [vmem:[#allocation2 + $0x38] sm:$0xf0] }
  0x1a   :  { %v1167_v38 = vor.u32 %v955_v35, %v782_v34  ;;  %v787_v39 = vor.u32 %v954_v36, %v784_v37  ;;  %v790_v40 = vld [vmem:[#allocation2 + $0x40] sm:$0xf]  ;;  %v957_v41 = vld [vmem:[#allocation2 + $0x44] sm:$0xf0]  ;;  %v956_v42 = vld [vmem:[#allocation2 + $0x44] sm:$0xf] }
  0x1b   :  { %v792_v43 = vld [vmem:[#allocation2 + $0x48] sm:$0xf0]  ;;  %v1170_v44 = vor.u32 %v957_v41, %v790_v40  ;;  %v995_v46 = vld [vmem:[#allocation7 + $0x78] sm:$0xff]  ;;  %v798_v47 = vld [vmem:[#allocation2 + $0x50] sm:$0xf] }
  0x1c   :  { %299 = vmatpush.bf16.msra.mxu0 %v968_v6  ;;  %v795_v45 = vor.u32 %v956_v42, %v792_v43  ;;  %655 = vmatpush.bf16.msra.mxu3 %v995_v46  ;;  %v959_v48 = vld [vmem:[#allocation2 + $0x54] sm:$0xf0]  ;;  %v958_v49 = vld [vmem:[#allocation2 + $0x54] sm:$0xf]  ;;  %v800_v50 = vld [vmem:[#allocation2 + $0x58] sm:$0xf0] }
  0x1d   :  { %348 = vmatpush.bf16.msra.mxu1 %v976_v7  ;;  %v1173_v51 = vor.u32 %v959_v48, %v798_v47  ;;  %v803_v52 = vor.u32 %v958_v49, %v800_v50  ;;  %v994_v53 = vld [vmem:[#allocation7 + $0x70] sm:$0xff]  ;;  %v987_v54 = vld [vmem:[#allocation7 + $0x38] sm:$0xff]  ;;  %v993_v55 = vld [vmem:[#allocation7 + $0x68] sm:$0xff] }
  0x1e   :  { %606 = vmatpush.bf16.msra.mxu2 %v987_v54  ;;  %v986_v56 = vld [vmem:[#allocation7 + $0x30] sm:$0xff]  ;;  %v992_v57 = vld [vmem:[#allocation7 + $0x60] sm:$0xff]  ;;  %v985_v58 = vld [vmem:[#allocation7 + $0x28] sm:$0xff] }
  0x1f   :  { %v806_v59 = vld [vmem:[#allocation2 + $0x60] sm:$0xf]  ;;  %v961_v60 = vld [vmem:[#allocation2 + $0x64] sm:$0xf0]  ;;  %v960_v61 = vld [vmem:[#allocation2 + $0x64] sm:$0xf] }
  0x20   :  { %300 = vmatpush.bf16.msra.mxu0 %v967_v8  ;;  %656 = vmatpush.bf16.msra.mxu3 %v994_v53  ;;  %v808_v62 = vld [vmem:[#allocation2 + $0x68] sm:$0xf0]  ;;  %v991_v63 = vld [vmem:[#allocation7 + $0x58] sm:$0xff]  ;;  %v1176_v0 = vor.u32 %v961_v60, %v806_v59  ;;  %v984_v2 = vld [vmem:[#allocation7 + $0x20] sm:$0xff] }
  0x21   :  { %349 = vmatpush.bf16.msra.mxu1 %v975_v9  ;;  %v811_v1 = vor.u32 %v960_v61, %v808_v62  ;;  %v990_v3 = vld [vmem:[#allocation7 + $0x50] sm:$0xff]  ;;  %v983_v4 = vld [vmem:[#allocation7 + $0x18] sm:$0xff]  ;;  %v989_v5 = vld [vmem:[#allocation7 + $0x48] sm:$0xff] }
  0x22   :  { %607 = vmatpush.bf16.msra.mxu2 %v986_v56  ;;  %v982_v6 = vld [vmem:[#allocation7 + $0x10] sm:$0xff]  ;;  %v988_v7 = vld [vmem:[#allocation7 + $0x40] sm:$0xff]  ;;  %v963_v9 = vld [vmem:[#allocation2 + $0x74] sm:$0xf0] }
  0x23   :  { %v814_v8 = vld [vmem:[#allocation2 + $0x70] sm:$0xf]  ;;  %v1186_v16 = vld [vmem:[%s1240_s2] ss:$0 sm:$0xff] }
  0x24   :  { %301 = vmatpush.bf16.msra.mxu0 %v966_v10  ;;  %657 = vmatpush.bf16.msra.mxu3 %v993_v55  ;;  %v962_v10 = vld [vmem:[#allocation2 + $0x74] sm:$0xf] }
  0x25   :  { %350 = vmatpush.bf16.msra.mxu1 %v974_v11  ;;  %v816_v11 = vld [vmem:[#allocation2 + $0x78] sm:$0xf0] }
  0x26   :  { %608 = vmatpush.bf16.msra.mxu2 %v985_v58 }
  0x28   :  { %302 = vmatpush.bf16.msra.mxu0 %v965_v12  ;;  %658 = vmatpush.bf16.msra.mxu3 %v992_v57  ;;  %v981_v12 = vld [vmem:[#allocation7 + $0x8] sm:$0xff] }
  0x29   :  { %351 = vmatpush.bf16.msra.mxu1 %v973_v13  ;;  %v1179_v13 = vor.u32 %v963_v9, %v814_v8 }
  0x2a   :  { %609 = vmatpush.bf16.msra.mxu2 %v984_v2 }
  0x2c   :  { %303 = vmatpush.bf16.msra.mxu0 %v964_v14  ;;  %659 = vmatpush.bf16.msra.mxu3 %v991_v63  ;;  %v819_v14 = vor.u32 %v962_v10, %v816_v11 }
  0x2d   :  { %352 = vmatpush.bf16.msra.mxu1 %v972_v15  ;;  %v980_v15 = vld [vmem:[#allocation7] sm:$0xff] }
  0x2e   :  { %610 = vmatpush.bf16.msra.mxu2 %v983_v4 }
  0x2f   :  { %304 = vmatmul.bf16.vlgmr.msra.gmra.mxu0 %v1158_v20 }
  0x30   :  { %353 = vmatmul.bf16.vlgmr.msra.gmra.mxu1 %v763_v21  ;;  %660 = vmatpush.bf16.msra.mxu3 %v990_v3 }
  0x32   :  { %611 = vmatpush.bf16.msra.mxu2 %v982_v6 }
  0x34   :  { %661 = vmatpush.bf16.msra.mxu3 %v989_v5 }
  0x36   :  { %612 = vmatpush.bf16.msra.mxu2 %v981_v12 }
  0x38   :  { %662 = vmatpush.bf16.msra.mxu3 %v988_v7 }
  0x3a   :  { %613 = vmatpush.bf16.msra.mxu2 %v980_v15 }
  0x3b   :  { %663 = vmatmul.bf16.vlgmr.msra.gmra.mxu3 %v1158_v20 }
  0x3f   :  { %309 = vmatmul.bf16.gmra.mxu0 %v1161_v26 }
  0x40   :  { %358 = vmatmul.bf16.gmra.mxu1 %v771_v27 }
  0x4b   :  { %668 = vmatmul.bf16.gmra.mxu3 %v1161_v26 }
  0x4f   :  { %314 = vmatmul.bf16.gmra.mxu0 %v1164_v32 }
  0x50   :  { %363 = vmatmul.bf16.gmra.mxu1 %v779_v33 }
  0x5b   :  { %673 = vmatmul.bf16.gmra.mxu3 %v1164_v32 }
  0x5f   :  { %319 = vmatmul.bf16.gmra.mxu0 %v1167_v38 }
  0x60   :  { %368 = vmatmul.bf16.gmra.mxu1 %v787_v39 }
  0x6b   :  { %678 = vmatmul.bf16.gmra.mxu3 %v1167_v38 }
  0x6f   :  { %324 = vmatmul.bf16.gmra.mxu0 %v1170_v44 }
  0x70   :  { %373 = vmatmul.bf16.gmra.mxu1 %v795_v45 }
  0x7b   :  { %683 = vmatmul.bf16.gmra.mxu3 %v1170_v44 }
  0x7f   :  { %329 = vmatmul.bf16.gmra.mxu0 %v1173_v51 }
  0x80   :  { %378 = vmatmul.bf16.gmra.mxu1 %v803_v52 }
  0x8b   :  { %688 = vmatmul.bf16.gmra.mxu3 %v1173_v51 }
  0x8f   :  { %334 = vmatmul.bf16.gmra.mxu0 %v1176_v0 }
  0x90   :  { %383 = vmatmul.bf16.gmra.mxu1 %v811_v1 }
  0x9b   :  { %693 = vmatmul.bf16.gmra.mxu3 %v1176_v0 }
  0x9f   :  { %339 = vmatmul.bf16.gmra.mxu0 %v1179_v13 }
  0xa0   :  { %388 = vmatmul.bf16.gmra.mxu1 %v819_v14 }
  0xab   :  { %698 = vmatmul.bf16.gmra.mxu3 %v1179_v13 }
  0xac   :  { %v305_v17 = vpop.f32.mrf.mxu0 }
  0xad   :  { %v354_v18 = vpop.f32.mrf.mxu1  ;;  %v306_v19 = vadd.f32 %v1186_v16, %v305_v17 }
  0xaf   :  { %v355_v21 = vadd.f32 %v354_v18, %v306_v19 }
  0xb1   :  { %v394_v20 = vmax.f32 %v355_v21, 0.0 }
  0xb3   :  { %v410_v27 = vpack.c.bf16 %v394_v20, %v394_v20 }
  0xb4   :  { %v307_v22 = vpop.f32.mrf.mxu0 }
  0xb5   :  { %v356_v23 = vpop.f32.mrf.mxu1  ;;  %v308_v24 = vadd.f32 %v1186_v16, %v307_v22  ;;  %v442_v33 = vunpack.c.l.b16 %v410_v27 }
  0xb7   :  { %v357_v25 = vadd.f32 %v356_v23, %v308_v24 }
  0xb9   :  { %v395_v28 = vmax.f32 %v357_v25, 0.0 }
  0xbb   :  { %v411_v29 = vpack.c.bf16 %v395_v28, %v395_v28 }
  0xbc   :  { %v310_v30 = vpop.f32.mrf.mxu0 }
  0xbd   :  { %v359_v31 = vpop.f32.mrf.mxu1  ;;  %v443_v26 = vunpack.c.l.b16 %v411_v29  ;;  %v311_v34 = vadd.f32 %v1186_v16, %v310_v30 }
  0xbf   :  { %v458_v35 = vpack.c.b16 %v443_v26, %v442_v33  ;;  %v360_v36 = vadd.f32 %v359_v31, %v311_v34 }
  0xc1   :  { %614 = vmatmul.bf16.vlgmr.msra.gmra.mxu2 %v458_v35  ;;  %v396_v40 = vmax.f32 %v360_v36, 0.0 }
  0xc3   :  { %v412_v43 = vpack.c.bf16 %v396_v40, %v396_v40 }
  0xc4   :  { %v312_v37 = vpop.f32.mrf.mxu0 }
  0xc5   :  { %v361_v39 = vpop.f32.mrf.mxu1  ;;  %v313_v41 = vadd.f32 %v1186_v16, %v312_v37  ;;  %v444_v48 = vunpack.c.l.b16 %v412_v43 }
  0xc7   :  { %v362_v42 = vadd.f32 %v361_v39, %v313_v41 }
  0xc9   :  { %v397_v45 = vmax.f32 %v362_v42, 0.0 }
  0xcb   :  { %v413_v46 = vpack.c.bf16 %v397_v45, %v397_v45 }
  0xcc   :  { %v315_v32 = vpop.f32.mrf.mxu0 }
  0xcd   :  { %v364_v47 = vpop.f32.mrf.mxu1  ;;  %v445_v49 = vunpack.c.l.b16 %v413_v46  ;;  %v316_v50 = vadd.f32 %v1186_v16, %v315_v32 }
  0xcf   :  { %v459_v52 = vpack.c.b16 %v445_v49, %v444_v48  ;;  %v365_v53 = vadd.f32 %v364_v47, %v316_v50 }
  0xd1   :  { %619 = vmatmul.bf16.gmra.mxu2 %v459_v52  ;;  %v398_v56 = vmax.f32 %v365_v53, 0.0 }
  0xd3   :  { %v414_v59 = vpack.c.bf16 %v398_v56, %v398_v56 }
  0xd4   :  { %v317_v54 = vpop.f32.mrf.mxu0 }
  0xd5   :  { %v366_v55 = vpop.f32.mrf.mxu1  ;;  %v318_v57 = vadd.f32 %v1186_v16, %v317_v54  ;;  %v446_v63 = vunpack.c.l.b16 %v414_v59 }
  0xd7   :  { %v367_v58 = vadd.f32 %v366_v55, %v318_v57 }
  0xd9   :  { %v399_v60 = vmax.f32 %v367_v58, 0.0 }
  0xdb   :  { %v415_v61 = vpack.c.bf16 %v399_v60, %v399_v60 }
  0xdc   :  { %v320_v38 = vpop.f32.mrf.mxu0 }
  0xdd   :  { %v369_v62 = vpop.f32.mrf.mxu1  ;;  %v447_v1 = vunpack.c.l.b16 %v415_v61  ;;  %v321_v2 = vadd.f32 %v1186_v16, %v320_v38 }
  0xdf   :  { %v460_v3 = vpack.c.b16 %v447_v1, %v446_v63  ;;  %v370_v4 = vadd.f32 %v369_v62, %v321_v2 }
  0xe1   :  { %624 = vmatmul.bf16.gmra.mxu2 %v460_v3  ;;  %v400_v7 = vmax.f32 %v370_v4, 0.0 }
  0xe3   :  { %v416_v10 = vpack.c.bf16 %v400_v7, %v400_v7  ;;  %v664_v7 = vpop.f32.mrf.mxu3 }
  0xe4   :  { %v322_v5 = vpop.f32.mrf.mxu0 }
  0xe5   :  { %v371_v6 = vpop.f32.mrf.mxu1  ;;  %v323_v8 = vadd.f32 %v1186_v16, %v322_v5  ;;  %v448_v15 = vunpack.c.l.b16 %v416_v10 }
  0xe7   :  { %v372_v9 = vadd.f32 %v371_v6, %v323_v8 }
  0xe9   :  { %v401_v11 = vmax.f32 %v372_v9, 0.0 }
  0xeb   :  { %v417_v12 = vpack.c.bf16 %v401_v11, %v401_v11 }
  0xec   :  { %v325_v44 = vpop.f32.mrf.mxu0 }
  0xed   :  { %v374_v14 = vpop.f32.mrf.mxu1  ;;  %v449_v17 = vunpack.c.l.b16 %v417_v12  ;;  %v326_v18 = vadd.f32 %v1186_v16, %v325_v44 }
  0xef   :  { %v461_v19 = vpack.c.b16 %v449_v17, %v448_v15  ;;  %v375_v21 = vadd.f32 %v374_v14, %v326_v18  ;;  %v666_v14 = vpop.f32.mrf.mxu3  ;;  %v1214_v17 = vld [vmem:[%s1242_s4] ss:$0 sm:$0xff]  ;;  %s1115_s4 = smov [#allocation8]  }
  0xf0   :  { %s740_s12 = sshll.u32 %s1115_s4, 4  ;;  %s741_s12 = int_to_ptr.vmem [resolvable:$true] %s740_s12 }
  0xf1   :  { %629 = vmatmul.bf16.gmra.mxu2 %v461_v19  ;;  %v402_v20 = vmax.f32 %v375_v21, 0.0 }
  0xf3   :  { %v418_v27 = vpack.c.bf16 %v402_v20, %v402_v20 }
  0xf4   :  { %v327_v22 = vpop.f32.mrf.mxu0 }
  0xf5   :  { %v376_v23 = vpop.f32.mrf.mxu1  ;;  %v328_v24 = vadd.f32 %v1186_v16, %v327_v22  ;;  %v450_v31 = vunpack.c.l.b16 %v418_v27 }
  0xf7   :  { %v377_v25 = vadd.f32 %v376_v23, %v328_v24  ;;  %v669_v15 = vpop.f32.mrf.mxu3 }
  0xf9   :  { %v403_v28 = vmax.f32 %v377_v25, 0.0 }
  0xfb   :  { %v419_v29 = vpack.c.bf16 %v403_v28, %v403_v28 }
  0xfc   :  { %v330_v51 = vpop.f32.mrf.mxu0 }
  0xfd   :  { %v379_v30 = vpop.f32.mrf.mxu1  ;;  %v451_v33 = vunpack.c.l.b16 %v419_v29  ;;  %v331_v26 = vadd.f32 %v1186_v16, %v330_v51 }
  0xff   :  { %v462_v34 = vpack.c.b16 %v451_v33, %v450_v31  ;;  %v380_v35 = vadd.f32 %v379_v30, %v331_v26  ;;  %v671_v19 = vpop.f32.mrf.mxu3 }
 0x101   :  { %634 = vmatmul.bf16.gmra.mxu2 %v462_v34  ;;  %v404_v39 = vmax.f32 %v380_v35, 0.0 }
 0x103   :  { %v420_v42 = vpack.c.bf16 %v404_v39, %v404_v39 }
 0x104   :  { %v332_v36 = vpop.f32.mrf.mxu0 }
 0x105   :  { %v381_v37 = vpop.f32.mrf.mxu1  ;;  %v333_v40 = vadd.f32 %v1186_v16, %v332_v36  ;;  %v452_v32 = vunpack.c.l.b16 %v420_v42 }
 0x107   :  { %v382_v41 = vadd.f32 %v381_v37, %v333_v40  ;;  %v674_v25 = vpop.f32.mrf.mxu3 }
 0x109   :  { %v405_v43 = vmax.f32 %v382_v41, 0.0 }
 0x10b   :  { %v421_v45 = vpack.c.bf16 %v405_v43, %v405_v43 }
 0x10c   :  { %v335_v0 = vpop.f32.mrf.mxu0 }
 0x10d   :  { %v384_v46 = vpop.f32.mrf.mxu1  ;;  %v453_v47 = vunpack.c.l.b16 %v421_v45  ;;  %v336_v48 = vadd.f32 %v1186_v16, %v335_v0 }
 0x10f   :  { %v463_v49 = vpack.c.b16 %v453_v47, %v452_v32  ;;  %v385_v50 = vadd.f32 %v384_v46, %v336_v48  ;;  %v676_v31 = vpop.f32.mrf.mxu3 }
 0x111   :  { %639 = vmatmul.bf16.gmra.mxu2 %v463_v49  ;;  %v406_v54 = vmax.f32 %v385_v50, 0.0 }
 0x113   :  { %v422_v57 = vpack.c.bf16 %v406_v54, %v406_v54 }
 0x114   :  { %v337_v52 = vpop.f32.mrf.mxu0 }
 0x115   :  { %v386_v53 = vpop.f32.mrf.mxu1  ;;  %v338_v55 = vadd.f32 %v1186_v16, %v337_v52  ;;  %v454_v61 = vunpack.c.l.b16 %v422_v57 }
 0x117   :  { %v387_v56 = vadd.f32 %v386_v53, %v338_v55  ;;  %v679_v37 = vpop.f32.mrf.mxu3 }
 0x119   :  { %v407_v58 = vmax.f32 %v387_v56, 0.0 }
 0x11b   :  { %v423_v59 = vpack.c.bf16 %v407_v58, %v407_v58 }
 0x11c   :  { %v340_v60 = vpop.f32.mrf.mxu0 }
 0x11d   :  { %v389_v13 = vpop.f32.mrf.mxu1  ;;  %v455_v38 = vunpack.c.l.b16 %v423_v59  ;;  %v341_v62 = vadd.f32 %v1186_v16, %v340_v60 }
 0x11f   :  { %v464_v63 = vpack.c.b16 %v455_v38, %v454_v61  ;;  %v390_v1 = vadd.f32 %v389_v13, %v341_v62  ;;  %v681_v45 = vpop.f32.mrf.mxu3 }
 0x121   :  { %644 = vmatmul.bf16.gmra.mxu2 %v464_v63  ;;  %v408_v3 = vmax.f32 %v390_v1, 0.0 }
 0x123   :  { %v424_v8 = vpack.c.bf16 %v408_v3, %v408_v3 }
 0x124   :  { %v342_v2 = vpop.f32.mrf.mxu0 }
 0x125   :  { %v343_v4 = vadd.f32 %v1186_v16, %v342_v2  ;;  %v391_v5 = vpop.f32.mrf.mxu1  ;;  %v456_v11 = vunpack.c.l.b16 %v424_v8 }
 0x127   :  { %v392_v6 = vadd.f32 %v391_v5, %v343_v4  ;;  %v684_v49 = vpop.f32.mrf.mxu3 }
 0x129   :  { %v409_v9 = vmax.f32 %v392_v6, 0.0 }
 0x12b   :  { %v425_v10 = vpack.c.bf16 %v409_v9, %v409_v9 }
 0x12d   :  { %v457_v12 = vunpack.c.l.b16 %v425_v10 }
 0x12f   :  { %v465_v44 = vpack.c.b16 %v457_v12, %v456_v11  ;;  %v686_v56 = vpop.f32.mrf.mxu3 }
 0x131   :  { %649 = vmatmul.bf16.gmra.mxu2 %v465_v44 }
 0x137   :  { %v689_v61 = vpop.f32.mrf.mxu3 }
 0x13f   :  { %v691_v3 = vpop.f32.mrf.mxu3 }
 0x144   :  { %v615_v18 = vpop.f32.mrf.mxu2 }
 0x145   :  { %v616_v16 = vadd.f32 %v1214_v17, %v615_v18 }
 0x147   :  { %v665_v21 = vadd.f32 %v664_v7, %v616_v16  ;;  %v694_v9 = vpop.f32.mrf.mxu3 }
 0x149   :  { %v704_v22 = vmax.f32 %v665_v21, 0.0 }
 0x14b   :  { %720 = vst [vmem:[#allocation8] sm:$0xff] %v704_v22 }
 0x14c   :  { %v617_v23 = vpop.f32.mrf.mxu2 }
 0x14d   :  { %v618_v20 = vadd.f32 %v1214_v17, %v617_v23 }
 0x14f   :  { %v667_v24 = vadd.f32 %v666_v14, %v618_v20 }
 0x151   :  { %v705_v27 = vmax.f32 %v667_v24, 0.0 }
 0x153   :  { %721 = vst [vmem:[#allocation8 + $0x8] sm:$0xff] %v705_v27 }
 0x154   :  { %v620_v28 = vpop.f32.mrf.mxu2 }
 0x155   :  { %v621_v29 = vadd.f32 %v1214_v17, %v620_v28 }
 0x157   :  { %v670_v51 = vadd.f32 %v669_v15, %v621_v29  ;;  %v696_v15 = vpop.f32.mrf.mxu3 }
 0x159   :  { %v706_v30 = vmax.f32 %v670_v51, 0.0 }
 0x15b   :  { %722 = vst [vmem:[#allocation8 + $0x10] sm:$0xff] %v706_v30 }
 0x15c   :  { %v622_v33 = vpop.f32.mrf.mxu2 }
 0x15d   :  { %v623_v26 = vadd.f32 %v1214_v17, %v622_v33 }
 0x15f   :  { %v672_v34 = vadd.f32 %v671_v19, %v623_v26  ;;  %v699_v22 = vpop.f32.mrf.mxu3 }
 0x161   :  { %v707_v35 = vmax.f32 %v672_v34, 0.0 }
 0x163   :  { %723 = vst [vmem:[#allocation8 + $0x18] sm:$0xff] %v707_v35 }
 0x164   :  { %v625_v36 = vpop.f32.mrf.mxu2 }
 0x165   :  { %v626_v39 = vadd.f32 %v1214_v17, %v625_v36 }
 0x167   :  { %v675_v40 = vadd.f32 %v674_v25, %v626_v39  ;;  %v701_v29 = vpop.f32.mrf.mxu3 }
 0x169   :  { %v708_v41 = vmax.f32 %v675_v40, 0.0 }
 0x16b   :  { %724 = vst [vmem:[#allocation8 + $0x20] sm:$0xff] %v708_v41 }
 0x16c   :  { %v627_v42 = vpop.f32.mrf.mxu2 }
 0x16d   :  { %v628_v43 = vadd.f32 %v1214_v17, %v627_v42 }
 0x16f   :  { %v677_v0 = vadd.f32 %v676_v31, %v628_v43 }
 0x171   :  { %v709_v46 = vmax.f32 %v677_v0, 0.0 }
 0x173   :  { %725 = vst [vmem:[#allocation8 + $0x28] sm:$0xff] %v709_v46 }
 0x174   :  { %v630_v32 = vpop.f32.mrf.mxu2 }
 0x175   :  { %v631_v47 = vadd.f32 %v1214_v17, %v630_v32 }
 0x177   :  { %v680_v48 = vadd.f32 %v679_v37, %v631_v47 }
 0x179   :  { %v710_v50 = vmax.f32 %v680_v48, 0.0 }
 0x17b   :  { %726 = vst [vmem:[#allocation8 + $0x30] sm:$0xff] %v710_v50 }
 0x17c   :  { %v632_v52 = vpop.f32.mrf.mxu2 }
 0x17d   :  { %v633_v53 = vadd.f32 %v1214_v17, %v632_v52 }
 0x17f   :  { %v682_v54 = vadd.f32 %v681_v45, %v633_v53 }
 0x181   :  { %v711_v55 = vmax.f32 %v682_v54, 0.0 }
 0x183   :  { %727 = vst [vmem:[#allocation8 + $0x38] sm:$0xff] %v711_v55 }
 0x184   :  { %v635_v57 = vpop.f32.mrf.mxu2 }
 0x185   :  { %v636_v58 = vadd.f32 %v1214_v17, %v635_v57 }
 0x187   :  { %v685_v59 = vadd.f32 %v684_v49, %v636_v58 }
 0x189   :  { %v712_v60 = vmax.f32 %v685_v59, 0.0 }
 0x18b   :  { %728 = vst [vmem:[#allocation8 + $0x40] sm:$0xff] %v712_v60 }
 0x18c   :  { %v637_v13 = vpop.f32.mrf.mxu2 }
 0x18d   :  { %v638_v38 = vadd.f32 %v1214_v17, %v637_v13 }
 0x18f   :  { %v687_v62 = vadd.f32 %v686_v56, %v638_v38 }
 0x191   :  { %v713_v63 = vmax.f32 %v687_v62, 0.0 }
 0x193   :  { %729 = vst [vmem:[#allocation8 + $0x48] sm:$0xff] %v713_v63 }
 0x194   :  { %v640_v1 = vpop.f32.mrf.mxu2 }
 0x195   :  { %v641_v2 = vadd.f32 %v1214_v17, %v640_v1 }
 0x197   :  { %v690_v4 = vadd.f32 %v689_v61, %v641_v2 }
 0x199   :  { %v714_v5 = vmax.f32 %v690_v4, 0.0 }
 0x19b   :  { %730 = vst [vmem:[#allocation8 + $0x50] sm:$0xff] %v714_v5 }
 0x19c   :  { %v642_v6 = vpop.f32.mrf.mxu2 }
 0x19d   :  { %v643_v7 = vadd.f32 %v1214_v17, %v642_v6 }
 0x19f   :  { %v692_v8 = vadd.f32 %v691_v3, %v643_v7 }
 0x1a1   :  { %v715_v10 = vmax.f32 %v692_v8, 0.0 }
 0x1a3   :  { %731 = vst [vmem:[#allocation8 + $0x58] sm:$0xff] %v715_v10 }
 0x1a4   :  { %v645_v11 = vpop.f32.mrf.mxu2 }
 0x1a5   :  { %v646_v12 = vadd.f32 %v1214_v17, %v645_v11 }
 0x1a7   :  { %v695_v44 = vadd.f32 %v694_v9, %v646_v12 }
 0x1a9   :  { %v716_v14 = vmax.f32 %v695_v44, 0.0 }
 0x1ab   :  { %732 = vst [vmem:[#allocation8 + $0x60] sm:$0xff] %v716_v14 }
 0x1ac   :  { %v647_v18 = vpop.f32.mrf.mxu2 }
 0x1ad   :  { %v648_v16 = vadd.f32 %v1214_v17, %v647_v18 }
 0x1af   :  { %v697_v19 = vadd.f32 %v696_v15, %v648_v16 }
 0x1b1   :  { %v717_v21 = vmax.f32 %v697_v19, 0.0 }
 0x1b3   :  { %733 = vst [vmem:[#allocation8 + $0x68] sm:$0xff] %v717_v21 }
 0x1b4   :  { %v650_v23 = vpop.f32.mrf.mxu2 }
 0x1b5   :  { %v651_v20 = vadd.f32 %v1214_v17, %v650_v23 }
 0x1b7   :  { %v700_v24 = vadd.f32 %v699_v22, %v651_v20 }
 0x1b9   :  { %v718_v25 = vmax.f32 %v700_v24, 0.0 }
 0x1bb   :  { %734 = vst [vmem:[#allocation8 + $0x70] sm:$0xff] %v718_v25 }
 0x1bc   :  { %v652_v27 = vpop.f32.mrf.mxu2 }
 0x1bd   :  { %v653_v28 = vadd.f32 %v1214_v17, %v652_v27 }
 0x1bf   :  { %v702_v51 = vadd.f32 %v701_v29, %v653_v28 }
 0x1c1   :  { %v719_v30 = vmax.f32 %v702_v51, 0.0 }
 0x1c3   :  { %735 = vst [vmem:[#allocation8 + $0x78] sm:$0xff] %v719_v30 }
 0x1c4   :  { %748 = dma.vmem_to_hbm [thread:$0]  %s741_s12, 2048, %s743_s15, [#allocation4], %s1112_s30, %s1112_s30, %s1113_s6  }
 0x1c5   :  { %1106 = dma.done.wait [#allocation4], 2048  }
 0x1c6   :  { %1107 = vsyncadd [#allocation4], 4294965248 }
 0x1c7   :  { %753 = vsyncpa [#allocation3], 1 }
 0x1c8   :  { %754 = vsyncpa [#allocation6], 1 }
 0x1c9   :  { %755 = vsyncpa [#allocation4], 1 }

</bundles_post_ra>
